<compile_context>
chip_gen: v6e
topology: v6e:2x2x1
jax: 0.10.0
libtpu: 0.0.40
codegen_flags: <defaults>
</compile_context>

<pallas_src>
import jax
import jax.numpy as jnp
from jax.experimental import pallas as pl
from jax.experimental.pallas import tpu as pltpu
import numpy as np

LANE = 128


def _round_up(n, m):
    return ((n + m - 1) // m) * m


def fuzzy_kernel(xa_ref, w_ref, out_ref):
    """One (TB, TO) output tile from a single fused MXU matmul.

    xa_ref:  (TB, Kpad)  augmented input [x*x | x | 1 | 0]   (streams along batch)
    w_ref:   (Kpad, TO)  fused weight [s^2 ; 2sc ; sum c^2 ; 0] (stationary over batch)
    out_ref: (TB, TO)    exp(-||scale*x + center||_2)
    """
    sq = jnp.dot(xa_ref[...], w_ref[...], preferred_element_type=jnp.float32)
    # Expanded-square form can dip slightly negative from cancellation near the
    # membership peak; clamp before sqrt to avoid NaNs.
    sq = jnp.maximum(sq, 0.0)
    out_ref[...] = jnp.exp(-jnp.sqrt(sq)).astype(out_ref.dtype)


def prepare_fuzzy_params(A, *, to=512, compute_dtype=jnp.float32):
    """Fold the module parameter A = [diag(scales)|centers] into ONE fused dense
    weight, once (not per forward call).

    Fused weight rows (driven by x_aug = [x*x, x, 1, 0...]):
      [0 : I)     scales**2              (dotted with x*x)
      [I : 2I)    2*scales*centers       (dotted with x)
      [2I]        sum_i centers**2       (bias, dotted with the constant 1)
      [2I+1 : )   zeros                  (lane padding)
    K and size_out are padded to lane-dense multiples of 128.
    """
    O, I, K = A.shape
    assert K == I + 1, "A must be (size_out, size_in, size_in+1)"
    scales = jnp.diagonal(A[:, :, :I], axis1=1, axis2=2)   # (O, I)
    centers = A[:, :, I]                                    # (O, I)

    TO = min(to, _round_up(O, LANE))      # lane-dense output tile (multiple of 128)
    Opad = _round_up(O, TO)
    Kpad = _round_up(2 * I + 1, LANE)     # lane/sublane-dense contraction depth

    W = jnp.zeros((Kpad, Opad), jnp.float32)
    W = W.at[:I, :O].set((scales * scales).T)
    W = W.at[I:2 * I, :O].set((2.0 * scales * centers).T)
    W = W.at[2 * I, :O].set(jnp.sum(centers * centers, axis=1))
    return dict(w=W.astype(compute_dtype), size_in=I, size_out=O, to=TO)


def fuzzy_layer_forward(x, params, *, tb=256):
    """x: (B, size_in) -> (B, size_out) f32 memberships."""
    W = params["w"]
    I, O, TO = params["size_in"], params["size_out"], params["to"]
    Kpad, Opad = W.shape
    B, I_in = x.shape
    assert I_in == I

    in_dtype = W.dtype
    itemsize = jnp.dtype(in_dtype).itemsize
    sub = 8 if itemsize >= 4 else 16          # sublane granularity is dtype-dependent

    TB = _round_up(min(tb, _round_up(B, sub)), sub)

    # Keep the double-buffered working set well inside VMEM on every generation
    # (v7x has only 64 MiB physical); shrink the batch tile (never TO) if needed.
    def need(tb_):
        return 2 * ((tb_ * Kpad + Kpad * TO) * itemsize + tb_ * TO * 4)

    budget = 48 << 20
    while need(TB) > budget and TB > sub:
        TB = _round_up(max(sub, TB // 2), sub)
    vmem_limit = int(min(max(2 * need(TB), 32 << 20), 48 << 20))

    Bpad = _round_up(B, TB)

    # Build the augmented input in f32 (x*x in full precision), cast once at the end.
    xf = x.astype(jnp.float32)
    xa = jnp.zeros((Bpad, Kpad), jnp.float32)
    xa = xa.at[:B, :I].set(xf * xf)
    xa = xa.at[:B, I:2 * I].set(xf)
    xa = xa.at[:B, 2 * I].set(1.0)
    xa = xa.astype(in_dtype)

    grid = (Opad // TO, Bpad // TB)   # o outer, b inner -> weight block stationary

    out = pl.pallas_call(
        fuzzy_kernel,
        out_shape=jax.ShapeDtypeStruct((Bpad, Opad), jnp.float32),
        grid_spec=pltpu.PrefetchScalarGridSpec(
            num_scalar_prefetch=0,
            grid=grid,
            in_specs=[
                pl.BlockSpec((TB, Kpad), lambda o, b: (b, 0)),   # x_aug streams
                pl.BlockSpec((Kpad, TO), lambda o, b: (0, o)),   # weights resident over b
            ],
            out_specs=pl.BlockSpec((TB, TO), lambda o, b: (b, o)),
        ),
        compiler_params=pltpu.CompilerParams(
            dimension_semantics=("parallel", "parallel"),
            vmem_limit_bytes=vmem_limit),
    )(xa, W)
    return out[:B, :O]


def build_params(size_in, size_out, key):
    """Deterministic re-creation of FuzzyLayer.fromdimentions' parameter A."""
    centers = jax.random.normal(key, (size_out, size_in), dtype=jnp.float32)
    scales = jnp.ones((size_out, size_in), dtype=jnp.float32)
    diag_part = jnp.einsum("oi,ij->oij", scales, jnp.eye(size_in, dtype=jnp.float32))
    A = jnp.concatenate([diag_part, centers[:, :, None]], axis=2)  # (O, I, I+1)
    return A


def reference_forward(x, A):
    """Pure-JAX reference using the general (un-exploited) A formulation."""
    B, size_in = x.shape
    ext_x = jnp.concatenate([x, jnp.ones((B, 1), dtype=x.dtype)], axis=1)
    mul = jnp.einsum("oik,bk->oib", A, ext_x)                 # (O, I, B)
    exponents = jnp.sqrt(jnp.sum(mul * mul, axis=1))          # (O, B)
    return jnp.exp(-exponents).T                              # (B, O)


if __name__ == "__main__":
    key = jax.random.PRNGKey(0)
    k1, k2, k3, k4, k5, k6 = jax.random.split(key, 6)

    # Case 1: tiny shapes consistent with the module.
    A = build_params(4, 6, k1)
    x = jax.random.normal(k2, (8, 4), dtype=jnp.float32)
    out = jax.block_until_ready(fuzzy_layer_forward(x, prepare_fuzzy_params(A)))
    ref = jax.block_until_ready(reference_forward(x, A))
    np.testing.assert_allclose(np.asarray(out), np.asarray(ref), rtol=1e-4, atol=1e-4)

    # Case 2: multi-step (o, b) grid with padding on both axes (weight-stationary path).
    A2 = build_params(16, 200, k3)
    x2 = jax.random.normal(k4, (50, 16), dtype=jnp.float32)
    out2 = jax.block_until_ready(
        fuzzy_layer_forward(x2, prepare_fuzzy_params(A2, to=128), tb=16))
    ref2 = jax.block_until_ready(reference_forward(x2, A2))
    np.testing.assert_allclose(np.asarray(out2), np.asarray(ref2), rtol=1e-4, atol=1e-4)

    # Case 3: bf16 weights/activations (f32 accumulation + f32 epilogue); looser
    # tolerance reflects bf16 input rounding in the expanded-square form.
    A3 = build_params(32, 300, k5)
    x3 = jax.random.normal(k6, (64, 32), dtype=jnp.float32)
    out3 = jax.block_until_ready(
        fuzzy_layer_forward(x3, prepare_fuzzy_params(A3, compute_dtype=jnp.bfloat16)))
    ref3 = jax.block_until_ready(reference_forward(x3, A3))
    np.testing.assert_allclose(np.asarray(out3), np.asarray(ref3), rtol=5e-2, atol=5e-2)

    print("KERNEL_OK")
</pallas_src>

<mosaic_0001>
module attributes {stable_mosaic.version = 11 : i64} {
  func.func @fuzzy_kernel(%arg0: i32, %arg1: i32, %arg2: memref<8x128xf32, #tpu.memory_space<vmem>>, %arg3: memref<128x128xf32, #tpu.memory_space<vmem>>, %arg4: memref<8x128xf32, #tpu.memory_space<vmem>>) attributes {dimension_semantics = [#tpu.dimension_semantics<parallel>, #tpu.dimension_semantics<parallel>], iteration_bounds = array<i64: 1, 1>, scalar_prefetch = 0 : i64, scratch_operands = 0 : i64, tpu.core_type = #tpu.core_type<tc>, window_params = [{transform_indices = @transform_0, window_bounds = array<i64: 8, 128>}, {transform_indices = @transform_1, window_bounds = array<i64: 128, 128>}, {transform_indices = @transform_2, window_bounds = array<i64: 8, 128>}]} {
    %c0 = arith.constant 0 : index
    %c0_0 = arith.constant 0 : index
    %0 = vector.load %arg2[%c0, %c0_0] : memref<8x128xf32, #tpu.memory_space<vmem>>, vector<8x128xf32>
    %c0_1 = arith.constant 0 : index
    %c0_2 = arith.constant 0 : index
    %1 = vector.load %arg3[%c0_1, %c0_2] : memref<128x128xf32, #tpu.memory_space<vmem>>, vector<128x128xf32>
    %cst = arith.constant dense<0.000000e+00> : vector<8x128xf32>
    %2 = tpu.matmul %0, %1, %cst {dimension_numbers = #tpu.dot_dimension_numbers<[1], [0], [0], [1], [0, 0, 1, 1], [], []>} : vector<8x128xf32>, vector<128x128xf32>, vector<8x128xf32> -> vector<8x128xf32>
    %cst_3 = arith.constant 0.000000e+00 : f32
    %3 = vector.broadcast %cst_3 : f32 to vector<8x128xf32>
    %4 = arith.maximumf %2, %3 : vector<8x128xf32>
    %5 = math.sqrt %4 : vector<8x128xf32>
    %cst_4 = arith.constant 0.000000e+00 : f32
    %6 = vector.broadcast %cst_4 : f32 to vector<8x128xf32>
    %7 = arith.subf %6, %5 : vector<8x128xf32>
    %8 = math.exp %7 : vector<8x128xf32>
    %c0_5 = arith.constant 0 : index
    %c0_6 = arith.constant 0 : index
    %9 = vector.load %arg4[%c0_5, %c0_6] : memref<8x128xf32, #tpu.memory_space<vmem>>, vector<8x128xf32>
    tpu.vector_store %arg4[%c0_5, %c0_6], %8 {strides = array<i32>} : memref<8x128xf32, #tpu.memory_space<vmem>>, vector<8x128xf32>,
    return
  }
  func.func @transform_0(%arg0: i32, %arg1: i32) -> (i32, i32) {
    %c0_i32 = arith.constant 0 : i32
    %c0_i32_0 = arith.constant 0 : i32
    return %arg1, %c0_i32 : i32, i32
  }
  func.func @transform_1(%arg0: i32, %arg1: i32) -> (i32, i32) {
    %c0_i32 = arith.constant 0 : i32
    %c0_i32_0 = arith.constant 0 : i32
    return %c0_i32, %arg0 : i32, i32
  }
  func.func @transform_2(%arg0: i32, %arg1: i32) -> (i32, i32) {
    %c0_i32 = arith.constant 0 : i32
    return %arg1, %arg0 : i32, i32
  }
}

</mosaic_0001>

<bundles_post_ra>
// kernel: tpu_custom_call.1
= control target key start
LH: loop header
LB: loop body
LE: loop exit
PB: predicated region body
PF: predicated region fallthrough
CT: control target
= control target key end

     0   :  { %7 = vsyncpa [#allocation3], 0  ;;  %s313_s0 = inlined_call_operand.hbm [shape: f32[8,128], index: 0, kind: input, shape index: {}]   ;;  %s314_s1 = inlined_call_operand.hbm [shape: f32[128,128], index: 1, kind: input, shape index: {}]   ;;  %s315_s2 = inlined_call_operand.hbm [shape: f32[8,128], index: 2, kind: output, shape index: {}]  }
   0x1   :  { %8 = vsyncpa [#allocation6], 0 }
   0x2   :  { %9 = vsyncpa [#allocation4], 0  ;;  %s282_s9 = smov [#allocation2]   ;;  %s283_s11 = smov [#allocation5]  }
   0x3   :  { %s16_s10 = sshll.u32 %s282_s9, 4  ;;  %s25_s12 = sshll.u32 %s283_s11, 4  ;;  %s17_s10 = int_to_ptr.vmem [resolvable:$true] %s16_s10  ;;  %s26_s12 = int_to_ptr.vmem [resolvable:$true] %s25_s12 }
   0x4   :  { %s224_s13 = scalar_lea.vmem %s17_s10, 128  ;;  %p229_p1 = scmp.lt.s32.totalorder %s17_s10, %s17_s10 }
   0x5   :  { %p225_p0 = scmp.ne.s32.totalorder %s17_s10, %s224_s13  ;;  %p230_p2 = scmp.lt.s32.totalorder %s224_s13, %s224_s13 }
   0x7   :  { %p231_p3 = por %p230_p2, %p229_p1 }
   0x9   :  { %p232_p4 = pnand %p231_p3, %p225_p0 }
   0xb   :  { %235 = shalt.err (!%p232_p4)
}
   0xc   :  { %19 = dma.hbm_to_vmem [thread:$0]  %s313_s0, 128, %s17_s10, [#allocation3]  }
   0xd   :  { %s244_s16 = scalar_lea.vmem %s26_s12, 2048  ;;  %p249_p6 = scmp.lt.s32.totalorder %s26_s12, %s26_s12 }
   0xe   :  { %p245_p5 = scmp.ne.s32.totalorder %s26_s12, %s244_s16  ;;  %p250_p7 = scmp.lt.s32.totalorder %s244_s16, %s244_s16 }
  0x10   :  { %p251_p8 = por %p250_p7, %p249_p6 }
  0x12   :  { %p252_p9 = pnand %p251_p8, %p245_p5 }
  0x14   :  { %255 = shalt.err (!%p252_p9)
}
  0x15   :  { %s284_s17 = smov 128   ;;  %s285_s18 = smov 8  }
  0x16   :  { %31 = dma.hbm_to_vmem [thread:$0]  %s314_s1, 2048, %s26_s12, [#allocation6], %s284_s17, %s284_s17, %s285_s18  }
  0x17   :  { %276 = dma.done.wait [#allocation3], 128  }
  0x18   :  { %277 = vsyncadd [#allocation3], 4294967168 }
  0x19   :  { %278 = dma.done.wait [#allocation6], 2048  }
  0x1a   :  { %279 = vsyncadd [#allocation6], 4294965248  ;;  %v286_v0 = vmov 0.0   ;;  %vm287_vm0 = vmmov 0   ;;  %v54_v1 = vld [vmem:[#allocation5 + $0x78] sm:$0xff]  ;;  %v53_v2 = vld [vmem:[#allocation5 + $0x70] sm:$0xff] }
  0x1b   :  { %170 = vmatprep.subr.mxu0 %v286_v0  ;;  %202 = vmatprep.mubr.msk.f32.mxu0 %vm287_vm0, %v286_v0  ;;  %v52_v3 = vld [vmem:[#allocation5 + $0x68] sm:$0xff]  ;;  %v51_v4 = vld [vmem:[#allocation5 + $0x60] sm:$0xff]  ;;  %v50_v5 = vld [vmem:[#allocation5 + $0x58] sm:$0xff]  ;;  %s288_s0 = smov [#allocation7]  }
  0x1c   :  { %171 = vmatpush3.msra.mxu0 %v54_v1  ;;  %v49_v6 = vld [vmem:[#allocation5 + $0x50] sm:$0xff]  ;;  %v48_v7 = vld [vmem:[#allocation5 + $0x48] sm:$0xff]  ;;  %v47_v8 = vld [vmem:[#allocation5 + $0x40] sm:$0xff]  ;;  %s143_s1 = sshll.u32 %s288_s0, 4  ;;  %s144_s1 = int_to_ptr.vmem [resolvable:$true] %s143_s1 }
  0x1d   :  { %172 = vmatprep.subr.mxu0 %v286_v0  ;;  %v46_v9 = vld [vmem:[#allocation5 + $0x38] sm:$0xff]  ;;  %v45_v10 = vld [vmem:[#allocation5 + $0x30] sm:$0xff]  ;;  %v44_v11 = vld [vmem:[#allocation5 + $0x28] sm:$0xff]  ;;  %s256_s21 = scalar_lea.vmem %s144_s1, 128  ;;  %p261_p11 = scmp.lt.s32.totalorder %s144_s1, %s144_s1 }
  0x1e   :  { %173 = vmatpush3.msra.mxu0 %v53_v2  ;;  %v43_v12 = vld [vmem:[#allocation5 + $0x20] sm:$0xff]  ;;  %v42_v13 = vld [vmem:[#allocation5 + $0x18] sm:$0xff]  ;;  %v41_v14 = vld [vmem:[#allocation5 + $0x10] sm:$0xff]  ;;  %p257_p10 = scmp.ne.s32.totalorder %s144_s1, %s256_s21  ;;  %p262_p12 = scmp.lt.s32.totalorder %s256_s21, %s256_s21 }
  0x1f   :  { %174 = vmatprep.subr.mxu0 %v286_v0  ;;  %v40_v15 = vld [vmem:[#allocation5 + $0x8] sm:$0xff]  ;;  %v39_v16 = vld [vmem:[#allocation5] sm:$0xff]  ;;  %v38_v17 = vld [vmem:[#allocation2] sm:$0xff] }
  0x20   :  { %175 = vmatpush3.msra.mxu0 %v52_v3  ;;  %p263_p13 = por %p262_p12, %p261_p11 }
  0x21   :  { %176 = vmatprep.subr.mxu0 %v286_v0 }
  0x22   :  { %177 = vmatpush3.msra.mxu0 %v51_v4  ;;  %p264_p0 = pnand %p263_p13, %p257_p10 }
  0x23   :  { %178 = vmatprep.subr.mxu0 %v286_v0 }
  0x24   :  { %179 = vmatpush3.msra.mxu0 %v50_v5 }
  0x25   :  { %180 = vmatprep.subr.mxu0 %v286_v0 }
  0x26   :  { %181 = vmatpush3.msra.mxu0 %v49_v6 }
  0x27   :  { %182 = vmatprep.subr.mxu0 %v286_v0 }
  0x28   :  { %183 = vmatpush3.msra.mxu0 %v48_v7 }
  0x29   :  { %184 = vmatprep.subr.mxu0 %v286_v0 }
  0x2a   :  { %185 = vmatpush3.msra.mxu0 %v47_v8 }
  0x2b   :  { %186 = vmatprep.subr.mxu0 %v286_v0 }
  0x2c   :  { %187 = vmatpush3.msra.mxu0 %v46_v9 }
  0x2d   :  { %188 = vmatprep.subr.mxu0 %v286_v0 }
  0x2e   :  { %189 = vmatpush3.msra.mxu0 %v45_v10 }
  0x2f   :  { %190 = vmatprep.subr.mxu0 %v286_v0 }
  0x30   :  { %191 = vmatpush3.msra.mxu0 %v44_v11 }
  0x31   :  { %192 = vmatprep.subr.mxu0 %v286_v0 }
  0x32   :  { %193 = vmatpush3.msra.mxu0 %v43_v12 }
  0x33   :  { %194 = vmatprep.subr.mxu0 %v286_v0 }
  0x34   :  { %195 = vmatpush3.msra.mxu0 %v42_v13 }
  0x35   :  { %196 = vmatprep.subr.mxu0 %v286_v0 }
  0x36   :  { %197 = vmatpush3.msra.mxu0 %v41_v14 }
  0x37   :  { %198 = vmatprep.subr.mxu0 %v286_v0 }
  0x38   :  { %199 = vmatpush3.msra.mxu0 %v40_v15 }
  0x39   :  { %200 = vmatprep.subr.mxu0 %v286_v0 }
  0x3a   :  { %201 = vmatpush3.msra.mxu0 %v39_v16 }
  0x3b   :  { %203 = vmatmul.mubr.f32.vlgmr.msra.gmra.mxu0 %v38_v17 }
  0xfb   :  { %v121_v18 = vpop.f32.mrf.mxu0 }
  0xfc   :  { %v125_v19 = vmax.f32 %v121_v18, 0.0 }
  0xfd   :  { %v204_v20 = vpop.f32.mrf.mxu0 }
  0xfe   :  { %212 = vrsqrt.f32 %v125_v19  ;;  %vm128_vm1 = vcmp.eq.f32.partialorder %v125_v19, inf  ;;  %v131_v23 = vand.u32 2147483648, %v125_v19  ;;  %vm130_vm2 = vcmp.eq.f32.partialorder %v125_v19, 0.0 }
 0x10b   :  { %v213_v21 = vpop.eup %212 }
 0x10c   :  { %v127_v22 = vmul.f32 %v213_v21, %v125_v19 }
 0x10e   :  { %v129_v24 = vsel %vm128_vm1, %v125_v19, %v127_v22 }
 0x10f   :  { %v132_v25 = vsel %vm130_vm2, %v131_v23, %v129_v24 }
 0x110   :  { %v133_v26 = vsub.f32 0.0, %v132_v25 }
 0x112   :  { %v134_v27 = vmul.f32 1.442695, %v133_v26 }
 0x114   :  { %214 = vpow2.f32 %v134_v27 }
 0x121   :  { %v215_v28 = vpop.eup %214 }
 0x122   :  { %136 = vst [vmem:[#allocation7] sm:$0xff] %v215_v28 }
 0x123   :  { %267 = shalt.err (!%p264_p0)
}
 0x124   :  { %146 = dma.vmem_to_hbm [thread:$0]  %s144_s1, 128, %s315_s2, [#allocation4]  }
 0x125   :  { %280 = dma.done.wait [#allocation4], 128  }
 0x126   :  { %281 = vsyncadd [#allocation4], 4294967168 }
 0x127   :  { %150 = vsyncpa [#allocation3], 1 }
 0x128   :  { %151 = vsyncpa [#allocation6], 1 }
 0x129   :  { %152 = vsyncpa [#allocation4], 1 }

</bundles_post_ra>
